<compile_context>
chip_gen: v6e
topology: v6e:2x2x1
jax: 0.10.0
libtpu: 0.0.40
codegen_flags: <defaults>
</compile_context>

<pallas_src>
import functools

import jax
import jax.numpy as jnp
from jax.experimental import pallas as pl
from jax.experimental.pallas import tpu as pltpu

C_PAD = 128  # lane-dense class dimension


def gcn_net_kernel(num_class,
                   x_ref, ahat_ref, adjs_ref,          # VMEM (bf16)
                   w1_ref, b1_ref, w2_ref, b2_ref,     # VMEM
                   drop_ref, yoh_ref,                  # VMEM (f32)
                   logsm_ref, xout_ref, preg_ref):     # VMEM outputs
    bf16 = jnp.bfloat16

    # ---- GCN layer 1: relu(A_hat @ (X @ W1) + b1), bf16 MXU / f32 acc ----
    xw1 = jnp.dot(x_ref[...], w1_ref[...], preferred_element_type=jnp.float32)
    h = jnp.dot(ahat_ref[...], xw1.astype(bf16),
                preferred_element_type=jnp.float32) + b1_ref[...]
    h = jnp.maximum(h, 0.0)

    # ---- F.dropout(p=0.5, training=True): precomputed {0, 2} scale mask ----
    h = h * drop_ref[...]

    # ---- GCN layer 2: A_hat @ (H @ W2) + b2 (class dim padded to 128) ----
    hw2 = jnp.dot(h.astype(bf16), w2_ref[...],
                  preferred_element_type=jnp.float32)
    x_out = jnp.dot(ahat_ref[...], hw2.astype(bf16),
                    preferred_element_type=jnp.float32) + b2_ref[...]
    xout_ref[...] = x_out                               # lane-dense store

    # Mask for the padded class lanes (static at trace time).
    col = jax.lax.broadcasted_iota(jnp.int32, x_out.shape, 1)
    valid = col < num_class
    neg = jnp.float32(-1e30)

    # ---- log_softmax(x_out, dim=1) over the valid classes ----
    xm = jnp.where(valid, x_out, neg)
    m = jnp.max(xm, axis=1, keepdims=True)
    lse = m + jnp.log(jnp.sum(jnp.exp(xm - m), axis=1, keepdims=True))
    logsm_ref[...] = x_out - lse        # padded lanes are sliced off outside

    # ---- preg = CrossEntropyLoss()((deg * adj) @ x_out, y) ----
    logits = jnp.dot(adjs_ref[...], x_out.astype(bf16),
                     preferred_element_type=jnp.float32)
    lmask = jnp.where(valid, logits, neg)
    m2 = jnp.max(lmask, axis=1, keepdims=True)
    lse2 = m2 + jnp.log(jnp.sum(jnp.exp(lmask - m2), axis=1, keepdims=True))
    picked = jnp.sum(yoh_ref[...] * logits, axis=1, keepdims=True)
    nll = lse2 - picked                                  # [N, 1]
    inv_n = jnp.float32(1.0 / x_out.shape[0])
    # (1,1) output kept in VMEM for lowering robustness of the scalar store.
    preg_ref[...] = jnp.sum(nll, axis=0, keepdims=True) * inv_n


@functools.partial(jax.jit, static_argnames=("num_class",))
def net_forward(x, ahat, adj, deg, w1, b1, w2, b2, drop_mask, y_onehot,
                *, num_class):
    n = x.shape[0]
    c = num_class
    pad_c = C_PAD - c
    bf16 = jnp.bfloat16

    # bf16 MXU operands, deg folded into the p-reg adjacency, C padded to 128.
    x_b = x.astype(bf16)
    ahat_b = ahat.astype(bf16)
    adjs_b = (deg * adj).astype(bf16)                   # diag(deg) @ A
    w1_b = w1.astype(bf16)
    w2_p = jnp.pad(w2, ((0, 0), (0, pad_c))).astype(bf16)
    b2_p = jnp.pad(b2, ((0, 0), (0, pad_c))).astype(jnp.float32)
    yoh_p = jnp.pad(y_onehot, ((0, 0), (0, pad_c))).astype(jnp.float32)

    vmem = pl.BlockSpec(memory_space=pltpu.MemorySpace.VMEM)
    out_shapes = (
        jax.ShapeDtypeStruct((n, C_PAD), jnp.float32),  # log_softmax (padded)
        jax.ShapeDtypeStruct((n, C_PAD), jnp.float32),  # x_out (padded)
        jax.ShapeDtypeStruct((1, 1), jnp.float32),      # preg
    )
    logsm_p, xout_p, preg = pl.pallas_call(
        functools.partial(gcn_net_kernel, c),
        out_shape=out_shapes,
        in_specs=[vmem] * 9,
        out_specs=(vmem, vmem, vmem),
        compiler_params=pltpu.CompilerParams(
            vmem_limit_bytes=32 * 1024 * 1024),
    )(x_b, ahat_b, adjs_b, w1_b, b1.astype(jnp.float32), w2_p, b2_p,
      drop_mask.astype(jnp.float32), yoh_p)

    return logsm_p[:, :c], xout_p[:, :c], preg[0, 0]


def gcn_normalize(adj):
    """A_hat = D^{-1/2} (A + I) D^{-1/2} with D = rowsum(A + I)."""
    n = adj.shape[0]
    a_tilde = adj + jnp.eye(n, dtype=adj.dtype)
    d = jnp.sum(a_tilde, axis=1)
    d_inv_sqrt = 1.0 / jnp.sqrt(jnp.maximum(d, 1e-12))
    return a_tilde * d_inv_sqrt[:, None] * d_inv_sqrt[None, :]


if __name__ == "__main__":
    key = jax.random.PRNGKey(0)
    N, F, H, C = 8, 16, 64, 4      # nodes, node features, hidden, num_class

    k_adj, k_x, k_w1, k_w2, k_y, k_drop = jax.random.split(key, 6)

    # Random symmetric 0/1 adjacency with no self loops (dense edge_index).
    a = (jax.random.uniform(k_adj, (N, N)) < 0.3).astype(jnp.float32)
    adj = jnp.clip(a + a.T, 0.0, 1.0) * (1.0 - jnp.eye(N, dtype=jnp.float32))

    ahat = gcn_normalize(adj)

    # deg term of the p-reg loss: deg = 1 / where(deg < 1, fill, deg)
    # (the reference fills with `10 ^ 6` == 12 due to Python xor; kept as-is)
    deg_raw = jnp.sum(adj, axis=1, keepdims=True)
    deg = 1.0 / jnp.where(deg_raw < 1.0, jnp.full_like(deg_raw, 12.0), deg_raw)

    x = jax.random.normal(k_x, (N, F), dtype=jnp.float32)

    # Deterministic glorot-ish weight init (GCNConv(F,64), GCNConv(64,C)).
    w1 = jax.random.normal(k_w1, (F, H), dtype=jnp.float32) / jnp.sqrt(F * 1.0)
    b1 = jnp.zeros((1, H), dtype=jnp.float32)
    w2 = jax.random.normal(k_w2, (H, C), dtype=jnp.float32) / jnp.sqrt(H * 1.0)
    b2 = jnp.zeros((1, C), dtype=jnp.float32)

    y = jax.random.randint(k_y, (N,), 0, C)
    y_onehot = jax.nn.one_hot(y, C, dtype=jnp.float32)

    # F.dropout(p=0.5, training=True) keep mask, inverse-scaled: values {0, 2}.
    keep = jax.random.bernoulli(k_drop, 0.5, (N, H))
    drop_mask = keep.astype(jnp.float32) * 2.0

    log_probs, x_out, preg = net_forward(
        x, ahat, adj, deg, w1, b1, w2, b2, drop_mask, y_onehot, num_class=C)
    jax.block_until_ready((log_probs, x_out, preg))

    assert log_probs.shape == (N, C)
    assert x_out.shape == (N, C)
    assert preg.shape == ()
    assert bool(jnp.isfinite(preg))
    print("KERNEL_OK")
</pallas_src>

<mosaic_0001>
module attributes {stable_mosaic.version = 11 : i64} {
  func.func @gcn_net_kernel(%arg0: memref<8x16xbf16, #tpu.memory_space<vmem>>, %arg1: memref<8x8xbf16, #tpu.memory_space<vmem>>, %arg2: memref<8x8xbf16, #tpu.memory_space<vmem>>, %arg3: memref<16x64xbf16, #tpu.memory_space<vmem>>, %arg4: memref<1x64xf32, #tpu.memory_space<vmem>>, %arg5: memref<64x128xbf16, #tpu.memory_space<vmem>>, %arg6: memref<1x128xf32, #tpu.memory_space<vmem>>, %arg7: memref<8x64xf32, #tpu.memory_space<vmem>>, %arg8: memref<8x128xf32, #tpu.memory_space<vmem>>, %arg9: memref<8x128xf32, #tpu.memory_space<vmem>>, %arg10: memref<8x128xf32, #tpu.memory_space<vmem>>, %arg11: memref<1x1xf32, #tpu.memory_space<vmem>>) attributes {dimension_semantics = [], scalar_prefetch = 0 : i64, scratch_operands = 0 : i64, tpu.core_type = #tpu.core_type<tc>} {
    %c0 = arith.constant 0 : index
    %c0_0 = arith.constant 0 : index
    %0 = vector.load %arg0[%c0, %c0_0] : memref<8x16xbf16, #tpu.memory_space<vmem>>, vector<8x16xbf16>
    %c0_1 = arith.constant 0 : index
    %c0_2 = arith.constant 0 : index
    %1 = vector.load %arg3[%c0_1, %c0_2] : memref<16x64xbf16, #tpu.memory_space<vmem>>, vector<16x64xbf16>
    %cst = arith.constant dense<0.000000e+00> : vector<8x64xf32>
    %2 = tpu.matmul %0, %1, %cst {dimension_numbers = #tpu.dot_dimension_numbers<[1], [0], [0], [1], [0, 0, 1, 1], [], []>} : vector<8x16xbf16>, vector<16x64xbf16>, vector<8x64xf32> -> vector<8x64xf32>
    %c0_3 = arith.constant 0 : index
    %c0_4 = arith.constant 0 : index
    %3 = vector.load %arg1[%c0_3, %c0_4] : memref<8x8xbf16, #tpu.memory_space<vmem>>, vector<8x8xbf16>
    %4 = arith.truncf %2 : vector<8x64xf32> to vector<8x64xbf16>
    %cst_5 = arith.constant dense<0.000000e+00> : vector<8x64xf32>
    %5 = tpu.matmul %3, %4, %cst_5 {dimension_numbers = #tpu.dot_dimension_numbers<[1], [0], [0], [1], [0, 0, 1, 1], [], []>} : vector<8x8xbf16>, vector<8x64xbf16>, vector<8x64xf32> -> vector<8x64xf32>
    %c0_6 = arith.constant 0 : index
    %c0_7 = arith.constant 0 : index
    %6 = vector.load %arg4[%c0_6, %c0_7] : memref<1x64xf32, #tpu.memory_space<vmem>>, vector<1x64xf32>
    %7 = vector.broadcast %6 : vector<1x64xf32> to vector<8x64xf32>
    %8 = arith.addf %5, %7 : vector<8x64xf32>
    %cst_8 = arith.constant 0.000000e+00 : f32
    %9 = vector.broadcast %cst_8 : f32 to vector<8x64xf32>
    %10 = arith.maximumf %8, %9 : vector<8x64xf32>
    %c0_9 = arith.constant 0 : index
    %c0_10 = arith.constant 0 : index
    %11 = vector.load %arg7[%c0_9, %c0_10] : memref<8x64xf32, #tpu.memory_space<vmem>>, vector<8x64xf32>
    %12 = arith.mulf %10, %11 : vector<8x64xf32>
    %13 = arith.truncf %12 : vector<8x64xf32> to vector<8x64xbf16>
    %c0_11 = arith.constant 0 : index
    %c0_12 = arith.constant 0 : index
    %14 = vector.load %arg5[%c0_11, %c0_12] : memref<64x128xbf16, #tpu.memory_space<vmem>>, vector<64x128xbf16>
    %cst_13 = arith.constant dense<0.000000e+00> : vector<8x128xf32>
    %15 = tpu.matmul %13, %14, %cst_13 {dimension_numbers = #tpu.dot_dimension_numbers<[1], [0], [0], [1], [0, 0, 1, 1], [], []>} : vector<8x64xbf16>, vector<64x128xbf16>, vector<8x128xf32> -> vector<8x128xf32>
    %c0_14 = arith.constant 0 : index
    %c0_15 = arith.constant 0 : index
    %16 = vector.load %arg1[%c0_14, %c0_15] : memref<8x8xbf16, #tpu.memory_space<vmem>>, vector<8x8xbf16>
    %17 = arith.truncf %15 : vector<8x128xf32> to vector<8x128xbf16>
    %cst_16 = arith.constant dense<0.000000e+00> : vector<8x128xf32>
    %18 = tpu.matmul %16, %17, %cst_16 {dimension_numbers = #tpu.dot_dimension_numbers<[1], [0], [0], [1], [0, 0, 1, 1], [], []>} : vector<8x8xbf16>, vector<8x128xbf16>, vector<8x128xf32> -> vector<8x128xf32>
    %c0_17 = arith.constant 0 : index
    %c0_18 = arith.constant 0 : index
    %19 = vector.load %arg6[%c0_17, %c0_18] : memref<1x128xf32, #tpu.memory_space<vmem>>, vector<1x128xf32>
    %20 = vector.broadcast %19 : vector<1x128xf32> to vector<8x128xf32>
    %21 = arith.addf %18, %20 : vector<8x128xf32>
    %c0_19 = arith.constant 0 : index
    %c0_20 = arith.constant 0 : index
    %22 = vector.load %arg10[%c0_19, %c0_20] : memref<8x128xf32, #tpu.memory_space<vmem>>, vector<8x128xf32>
    tpu.vector_store %arg10[%c0_19, %c0_20], %21 {strides = array<i32>} : memref<8x128xf32, #tpu.memory_space<vmem>>, vector<8x128xf32>,
    %23 = tpu.iota {dimensions = array<i32: 1>} : vector<8x128xi32>
    %c4_i32 = arith.constant 4 : i32
    %24 = vector.broadcast %c4_i32 : i32 to vector<8x128xi32>
    %25 = arith.cmpi slt, %23, %24 : vector<8x128xi32>
    %cst_21 = arith.constant -1.000000e+30 : f32
    %26 = vector.broadcast %cst_21 : f32 to vector<8x128xf32>
    %27 = arith.select %25, %21, %26 : vector<8x128xi1>, vector<8x128xf32>
    %cst_22 = arith.constant dense<0xFF800000> : vector<8xf32>
    %28 = vector.multi_reduction <maximumf>, %27, %cst_22 [1] : vector<8x128xf32> to vector<8xf32>
    %29 = vector.shape_cast %28 : vector<8xf32> to vector<8x1xf32>
    %30 = vector.broadcast %29 : vector<8x1xf32> to vector<8x128xf32>
    %31 = arith.subf %27, %30 : vector<8x128xf32>
    %32 = math.exp %31 : vector<8x128xf32>
    %cst_23 = arith.constant dense<0.000000e+00> : vector<8xf32>
    %33 = vector.multi_reduction <add>, %32, %cst_23 [1] : vector<8x128xf32> to vector<8xf32>
    %34 = vector.shape_cast %33 : vector<8xf32> to vector<8x1xf32>
    %35 = math.log %34 : vector<8x1xf32>
    %36 = arith.addf %29, %35 : vector<8x1xf32>
    %37 = vector.broadcast %36 : vector<8x1xf32> to vector<8x128xf32>
    %38 = arith.subf %21, %37 : vector<8x128xf32>
    %c0_24 = arith.constant 0 : index
    %c0_25 = arith.constant 0 : index
    %39 = vector.load %arg9[%c0_24, %c0_25] : memref<8x128xf32, #tpu.memory_space<vmem>>, vector<8x128xf32>
    tpu.vector_store %arg9[%c0_24, %c0_25], %38 {strides = array<i32>} : memref<8x128xf32, #tpu.memory_space<vmem>>, vector<8x128xf32>,
    %c0_26 = arith.constant 0 : index
    %c0_27 = arith.constant 0 : index
    %40 = vector.load %arg2[%c0_26, %c0_27] : memref<8x8xbf16, #tpu.memory_space<vmem>>, vector<8x8xbf16>
    %41 = arith.truncf %21 : vector<8x128xf32> to vector<8x128xbf16>
    %cst_28 = arith.constant dense<0.000000e+00> : vector<8x128xf32>
    %42 = tpu.matmul %40, %41, %cst_28 {dimension_numbers = #tpu.dot_dimension_numbers<[1], [0], [0], [1], [0, 0, 1, 1], [], []>} : vector<8x8xbf16>, vector<8x128xbf16>, vector<8x128xf32> -> vector<8x128xf32>
    %cst_29 = arith.constant -1.000000e+30 : f32
    %43 = vector.broadcast %cst_29 : f32 to vector<8x128xf32>
    %44 = arith.select %25, %42, %43 : vector<8x128xi1>, vector<8x128xf32>
    %cst_30 = arith.constant dense<0xFF800000> : vector<8xf32>
    %45 = vector.multi_reduction <maximumf>, %44, %cst_30 [1] : vector<8x128xf32> to vector<8xf32>
    %46 = vector.shape_cast %45 : vector<8xf32> to vector<8x1xf32>
    %47 = vector.broadcast %46 : vector<8x1xf32> to vector<8x128xf32>
    %48 = arith.subf %44, %47 : vector<8x128xf32>
    %49 = math.exp %48 : vector<8x128xf32>
    %cst_31 = arith.constant dense<0.000000e+00> : vector<8xf32>
    %50 = vector.multi_reduction <add>, %49, %cst_31 [1] : vector<8x128xf32> to vector<8xf32>
    %51 = vector.shape_cast %50 : vector<8xf32> to vector<8x1xf32>
    %52 = math.log %51 : vector<8x1xf32>
    %53 = arith.addf %46, %52 : vector<8x1xf32>
    %c0_32 = arith.constant 0 : index
    %c0_33 = arith.constant 0 : index
    %54 = vector.load %arg8[%c0_32, %c0_33] : memref<8x128xf32, #tpu.memory_space<vmem>>, vector<8x128xf32>
    %55 = arith.mulf %54, %42 : vector<8x128xf32>
    %cst_34 = arith.constant dense<0.000000e+00> : vector<8xf32>
    %56 = vector.multi_reduction <add>, %55, %cst_34 [1] : vector<8x128xf32> to vector<8xf32>
    %57 = vector.shape_cast %56 : vector<8xf32> to vector<8x1xf32>
    %58 = arith.subf %53, %57 : vector<8x1xf32>
    %cst_35 = arith.constant dense<0.000000e+00> : vector<1xf32>
    %59 = vector.multi_reduction <add>, %58, %cst_35 [0] : vector<8x1xf32> to vector<1xf32>
    %60 = vector.shape_cast %59 : vector<1xf32> to vector<1x1xf32>
    %cst_36 = arith.constant 1.250000e-01 : f32
    %61 = vector.broadcast %cst_36 : f32 to vector<1x1xf32>
    %62 = arith.mulf %60, %61 : vector<1x1xf32>
    %c0_37 = arith.constant 0 : index
    %c0_38 = arith.constant 0 : index
    %63 = vector.load %arg11[%c0_37, %c0_38] : memref<1x1xf32, #tpu.memory_space<vmem>>, vector<1x1xf32>
    tpu.vector_store %arg11[%c0_37, %c0_38], %62 {strides = array<i32>} : memref<1x1xf32, #tpu.memory_space<vmem>>, vector<1x1xf32>,
    return
  }
}

</mosaic_0001>

<bundles_post_ra>
// kernel: net_forward.1
= control target key start
LH: loop header
LB: loop body
LE: loop exit
PB: predicated region body
PF: predicated region fallthrough
CT: control target
= control target key end

     0   :  { %v489_v1 = vmov 0.0   ;;  %vm46_vm0 = vcmask 130048   ;;  %vm490_vm1 = vmmov 0   ;;  %s608_s0 = inlined_call_operand.vmem [shape: bf16[8,16], index: 0, kind: input, shape index: {}]   ;;  %s609_s1 = inlined_call_operand.vmem [shape: bf16[8,8], index: 1, kind: input, shape index: {}]   ;;  %s610_s2 = inlined_call_operand.vmem [shape: bf16[8,8], index: 2, kind: input, shape index: {}]   ;;  %s611_s3 = inlined_call_operand.vmem [shape: bf16[16,64], index: 3, kind: input, shape index: {}]   ;;  %s612_s4 = inlined_call_operand.vmem [shape: f32[1,64], index: 4, kind: input, shape index: {}]   ;;  %s613_s5 = inlined_call_operand.vmem [shape: bf16[64,128], index: 5, kind: input, shape index: {}]   ;;  %s614_s6 = inlined_call_operand.vmem [shape: f32[1,128], index: 6, kind: input, shape index: {}]   ;;  %s615_s7 = inlined_call_operand.vmem [shape: f32[8,64], index: 7, kind: input, shape index: {}]   ;;  %s616_s8 = inlined_call_operand.vmem [shape: f32[8,128], index: 8, kind: input, shape index: {}]   ;;  %s617_s9 = inlined_call_operand.vmem [shape: f32[8,128], index: 9, kind: output, shape index: {0}]   ;;  %s618_s10 = inlined_call_operand.vmem [shape: f32[8,128], index: 10, kind: output, shape index: {1}]   ;;  %s619_s11 = inlined_call_operand.hbm [shape: f32[1,1], index: 11, kind: output, shape index: {2}]  }
   0x1   :  { %v454_v0 = vld [vmem:[%s611_s3] sm:$0xff]   ;;  %415 = vmatprep.subr.bf16.mxu0 %v489_v1  ;;  %421 = vmatprep.subr.bf16.mxu1 %v489_v1 }
   0x2   :  { %v37_v2 = vld [vmem:[%s608_s0] sm:$0xf]  ;;  %416 = vmatpush3.bf16.msra.mxu0 %v454_v0  ;;  %417 = vmatprep.mubr.msk.bf16.mxu0 %vm490_vm1, %v489_v1 }
   0x3   :  { %423 = vmatprep.mubr.msk.bf16.mxu1 %vm490_vm1, %v489_v1  ;;  %427 = vmatprep.subr.bf16.mxu0 %v489_v1 }
   0x4   :  { %17 = vsyncpa [#allocation3], 0  ;;  %v455_v3 = vld [vmem:[%s613_s5 + $0x18] sm:$0xff]   ;;  %v456_v4 = vld [vmem:[%s613_s5 + $0x10] sm:$0xff]   ;;  %vm103_vm2 = vcmask 1043456   ;;  %vm99_vm3 = vcmask 64512   ;;  %v279_v39 = vlaneseq }
   0x5   :  { %418 = vmatmul.mubr.msk.bf16.vlgmr.msra.gmra.mxu0 %vm46_vm0, %v37_v2  ;;  %v90_v10 = vld [vmem:[%s609_s1] sm:$0xf]  ;;  %v457_v12 = vld [vmem:[%s613_s5 + $0x8] sm:$0xff]   ;;  %vm183_vm4 = vcmask 523264   ;;  %s491_s16 = smov [#allocation2]   ;;  %vm366_vm6 = vcmask 0  }
   0x6   :  { %435 = vmatprep.mubr.msk.bf16.mxu0 %vm490_vm1, %v489_v1  ;;  %428 = vmatpush3.bf16.msra.mxu0 %v455_v3  ;;  %v458_v13 = vld [vmem:[%s613_s5] sm:$0xff]   ;;  %v280_v40 = vand.u32 127, %v279_v39  ;;  %s378_s17 = sshll.u32 %s491_s16, 4  ;;  %s379_s17 = int_to_ptr.vmem [resolvable:$true] %s378_s17 }
   0x7   :  { %429 = vmatprep.subr.bf16.mxu0 %v489_v1  ;;  %v392_v14 = vld [vmem:[%s612_s4] ss:$0 sm:$0xff]  ;;  %s467_s18 = scalar_lea.vmem %s379_s17, 16  ;;  %s471_s19 = scalar_lea.vmem %s379_s17, 32 }
   0x8   :  { %v148_v17 = vld [vmem:[%s615_s7] sm:$0xff]  ;;  %vm281_vm5 = vcmp.lt.s32.totalorder %v280_v40, 4  ;;  %p468_p0 = scmp.ne.s32.totalorder %s379_s17, %s467_s18  ;;  %p472_p1 = scmp.lt.s32.totalorder %s379_s17, %s379_s17 }
   0x9   :  { %v399_v30 = vld [vmem:[%s614_s6] ss:$0 sm:$0xff]  ;;  %p473_p2 = scmp.lt.s32.totalorder %s471_s19, %s467_s18 }
   0xa   :  { %430 = vmatpush3.bf16.msra.mxu0 %v456_v4  ;;  %v295_v38 = vld [vmem:[%s610_s2] sm:$0xf] }
   0xb   :  { %431 = vmatprep.subr.bf16.mxu0 %v489_v1  ;;  %v354_v46 = vld [vmem:[%s616_s8] sm:$0xff]  ;;  %p474_p3 = por %p473_p2, %p472_p1 }
   0xd   :  { %p475_p4 = pnand %p474_p3, %p468_p0 }
   0xe   :  { %432 = vmatpush3.bf16.msra.mxu0 %v457_v12 }
   0xf   :  { %433 = vmatprep.subr.bf16.mxu0 %v489_v1 }
  0x12   :  { %434 = vmatpush3.bf16.msra.mxu0 %v458_v13 }
  0xc5   :  { %v84_v5 = vpop.f32.mrf.mxu0 }
  0xc6   :  { %v91_v6 = vpack.c.bf16 %v84_v5, %v84_v5 }
  0xc7   :  { %v419_v7 = vpop.f32.mrf.mxu0 }
  0xc8   :  { %v105_v8 = vsel %vm103_vm2, %v91_v6, 0 }
  0xc9   :  { %v87_v9 = vpop.f32.mrf.mxu0  ;;  %422 = vmatpush3.bf16.msra.mxu1 %v105_v8 }
  0xca   :  { %439 = vmatprep.subr.bf16.mxu1 %v489_v1 }
  0xcb   :  { %v420_v11 = vpop.f32.mrf.mxu0 }
  0xcc   :  { %424 = vmatmul.mubr.msk.bf16.vlgmr.msra.gmra.mxu1 %vm99_vm3, %v90_v10 }
  0xcd   :  { %441 = vmatprep.mubr.msk.bf16.mxu1 %vm490_vm1, %v489_v1 }
 0x18c   :  { %v141_v15 = vpop.f32.mrf.mxu1 }
 0x18d   :  { %v142_v16 = vadd.f32 %v392_v14, %v141_v15 }
 0x18e   :  { %v425_v18 = vpop.f32.mrf.mxu1 }
 0x18f   :  { %v147_v19 = vmax.f32 %v142_v16, 0.0 }
 0x190   :  { %v144_v20 = vpop.f32.mrf.mxu1 }
 0x191   :  { %v149_v21 = vmul.f32 %v148_v17, %v147_v19 }
 0x192   :  { %v426_v22 = vpop.f32.mrf.mxu1 }
 0x193   :  { %v150_v23 = vpack.c.bf16 %v149_v21, %v149_v21 }
 0x195   :  { %436 = vmatmul.mubr.msk.bf16.vlgmr.msra.gmra.mxu0 %vm183_vm4, %v150_v23 }
 0x255   :  { %v221_v24 = vpop.f32.mrf.mxu0 }
 0x256   :  { %v227_v25 = vpack.c.bf16 %v221_v24, %v221_v24 }
 0x257   :  { %v437_v26 = vpop.f32.mrf.mxu0 }
 0x258   :  { %v236_v27 = vsel %vm103_vm2, %v227_v25, 0 }
 0x259   :  { %v224_v28 = vpop.f32.mrf.mxu0  ;;  %440 = vmatpush3.bf16.msra.mxu1 %v236_v27 }
 0x25a   :  { %445 = vmatprep.subr.bf16.mxu1 %v489_v1 }
 0x25b   :  { %v438_v29 = vpop.f32.mrf.mxu0 }
 0x25c   :  { %442 = vmatmul.mubr.msk.bf16.vlgmr.msra.gmra.mxu1 %vm99_vm3, %v90_v10 }
 0x25d   :  { %447 = vmatprep.mubr.msk.bf16.mxu1 %vm490_vm1, %v489_v1 }
 0x31c   :  { %v272_v31 = vpop.f32.mrf.mxu1 }
 0x31d   :  { %v273_v32 = vadd.f32 %v399_v30, %v272_v31 }
 0x31e   :  { %v443_v33 = vpop.f32.mrf.mxu1 }
 0x31f   :  { %278 = vst [vmem:[%s618_s10] sm:$0xff] %v273_v32  ;;  %v296_v34 = vpack.c.bf16 %v273_v32, %v273_v32  ;;  %v282_v45 = vsel %vm281_vm5, %v273_v32, -1e+30 }
 0x320   :  { %v275_v35 = vpop.f32.mrf.mxu1 }
 0x321   :  { %v301_v36 = vsel %vm103_vm2, %v296_v34, 0 }
 0x322   :  { %v444_v37 = vpop.f32.mrf.mxu1  ;;  %446 = vmatpush3.bf16.msra.mxu1 %v301_v36 }
 0x325   :  { %448 = vmatmul.mubr.msk.bf16.vlgmr.msra.gmra.mxu1 %vm99_vm3, %v295_v38 }
 0x3e5   :  { %v337_v41 = vpop.f32.mrf.mxu1 }
 0x3e6   :  { %v343_v42 = vsel %vm281_vm5, %v337_v41, -1e+30  ;;  %v355_v48 = vmul.f32 %v354_v46, %v337_v41 }
 0x3e7   :  { %344 = vmax.xlane.f32.xlu0 %v343_v42  ;;  %v449_v43 = vpop.f32.mrf.mxu1 }
 0x3e9   :  { %v340_v44 = vpop.f32.mrf.mxu1 }
 0x3eb   :  { %283 = vmax.xlane.f32.xlu0 %v282_v45  ;;  %v450_v47 = vpop.f32.mrf.mxu1 }
 0x3ef   :  { %356 = vadd.xlane.f32.xlu0 %v355_v48 }
 0x470   :  { %v345_v49 = vpop.xlane.xlu0 %344 }
 0x471   :  { %v346_v50 = vsub.f32 %v343_v42, %v345_v49 }
 0x473   :  { %v347_v51 = vmul.f32 1.442695, %v346_v50 }
 0x474   :  { %v284_v52 = vpop.xlane.xlu0 %283 }
 0x475   :  { %459 = vpow2.f32 %v347_v51  ;;  %v285_v53 = vsub.f32 %v282_v45, %v284_v52 }
 0x477   :  { %v286_v54 = vmul.f32 1.442695, %v285_v53 }
 0x478   :  { %v357_v63 = vpop.xlane.xlu0 %356 }
 0x479   :  { %461 = vpow2.f32 %v286_v54 }
 0x482   :  { %v460_v55 = vpop.eup %459 }
 0x483   :  { %349 = vadd.xlane.f32.xlu1 %v460_v55 }
 0x486   :  { %v462_v56 = vpop.eup %461 }
 0x487   :  { %288 = vadd.xlane.f32.xlu1 %v462_v56 }
 0x50c   :  { %v350_v57 = vpop.xlane.xlu1 %349 }
 0x50d   :  { %463 = vlog2.f32 %v350_v57 }
 0x510   :  { %v289_v58 = vpop.xlane.xlu1 %288 }
 0x511   :  { %465 = vlog2.f32 %v289_v58 }
 0x51a   :  { %v464_v59 = vpop.eup %463 }
 0x51b   :  { %v352_v60 = vmul.f32 0.6931472, %v464_v59 }
 0x51d   :  { %v353_v61 = vadd.f32 %v352_v60, %v345_v49 }
 0x51e   :  { %v466_v62 = vpop.eup %465 }
 0x51f   :  { %v358_v0 = vsub.f32 %v353_v61, %v357_v63  ;;  %v291_v1 = vmul.f32 0.6931472, %v466_v62 }
 0x521   :  { %v359_v2 = vrot.slane %v358_v0, 4  ;;  %v292_v3 = vadd.f32 %v291_v1, %v284_v52 }
 0x523   :  { %v293_v4 = vsub.f32 %v273_v32, %v292_v3  ;;  %v360_v5 = vadd.f32 %v359_v2, %v358_v0 }
 0x525   :  { %294 = vst [vmem:[%s617_s9] sm:$0xff] %v293_v4  ;;  %v361_v6 = vrot.slane %v360_v5, 2 }
 0x527   :  { %v362_v7 = vadd.f32 %v361_v6, %v360_v5 }
 0x529   :  { %v363_v8 = vrot.slane %v362_v7, 1 }
 0x52b   :  { %v364_v9 = vadd.f32 %v363_v8, %v362_v7 }
 0x52d   :  { %v365_v10 = vmul.f32 0.125, %v364_v9 }
 0x52f   :  { %367 = vst.msk [vmem:[#allocation2] sm:$0x1] %vm366_vm6, %v365_v10 }
 0x530   :  { %478 = shalt.err (!%p475_p4)
}
 0x531   :  { %381 = dma.vmem_to_hbm [thread:$0]  %s379_s17, 16, %s619_s11, [#allocation3]  }
 0x532   :  { %487 = dma.done.wait [#allocation3], 16  }
 0x533   :  { %488 = vsyncadd [#allocation3], 4294967280 }
 0x534   :  { %389 = vsyncpa [#allocation3], 1 }

</bundles_post_ra>
